<compile_context>
chip_gen: v7x
topology: tpu7x:2x2x1
jax: 0.10.0
libtpu: 0.0.40
codegen_flags: <defaults>
</compile_context>

<pallas_src>
import functools
import math

import jax
import jax.numpy as jnp
from jax.experimental import pallas as pl
from jax.experimental.pallas import tpu as pltpu


def _vavg_mse_row_kernel(x_ref, y_ref, m_ref, out_ref, *, inv_d):
    # x_ref / y_ref: (TILE_R, D) in native dtype; m_ref / out_ref: (TILE_R, 1) f32.
    diff = x_ref[...].astype(jnp.float32) - y_ref[...].astype(jnp.float32)
    row_mean = jnp.sum(diff, axis=-1, keepdims=True) * jnp.float32(inv_d)  # (TILE_R, 1)
    out_ref[...] = row_mean * row_mean * m_ref[...]


def _round_up(v, m):
    return ((v + m - 1) // m) * m


def vector_average_mse_loss(x, y, prediction_mask, reduction="mean",
                            target_tile_bytes=4 * 1024 * 1024):
    """Pallas implementation of VectorAverageMSELoss.forward.

    x, y: [..., D] (any float dtype); prediction_mask: [...] matching the
    leading dims.  reduction in {'mean', 'sum', 'none'}.
    """
    assert x.shape == y.shape
    assert prediction_mask.shape == x.shape[:-1]
    D = x.shape[-1]
    R = math.prod(x.shape[:-1])

    itemsize = jnp.dtype(x.dtype).itemsize
    # Sublane packing: f32 -> 8 rows/vreg, bf16 -> 16, int8/fp8 -> 32.
    align = max(8, 32 // itemsize)

    # Row-tile sized for ~target_tile_bytes per input tile, then evened out
    # across the grid so padding is < align rows per tile.
    tile_r = max(align, (target_tile_bytes // max(1, D * itemsize)) // align * align)
    tile_r = min(tile_r, _round_up(R, align))
    num_tiles = -(-R // tile_r)
    tile_r = _round_up(-(-R // num_tiles), align)
    R_pad = num_tiles * tile_r

    xf = x.reshape(R, D)
    yf = y.reshape(R, D)
    mask_f32 = prediction_mask.astype(jnp.float32)
    mf = mask_f32.reshape(R, 1)
    if R_pad != R:
        pad = R_pad - R
        xf = jnp.pad(xf, ((0, pad), (0, 0)))
        yf = jnp.pad(yf, ((0, pad), (0, 0)))
        mf = jnp.pad(mf, ((0, pad), (0, 0)))  # padded rows masked to zero

    grid_spec = pltpu.PrefetchScalarGridSpec(
        num_scalar_prefetch=0,
        grid=(num_tiles,),
        in_specs=[
            pl.BlockSpec((tile_r, D), lambda i: (i, 0)),
            pl.BlockSpec((tile_r, D), lambda i: (i, 0)),
            pl.BlockSpec((tile_r, 1), lambda i: (i, 0)),
        ],
        out_specs=pl.BlockSpec((tile_r, 1), lambda i: (i, 0)),
    )

    cost = pl.CostEstimate(
        flops=3 * R_pad * D,
        transcendentals=0,
        bytes_accessed=2 * R_pad * D * itemsize + 2 * R_pad * 4,
    )

    per_row = pl.pallas_call(
        functools.partial(_vavg_mse_row_kernel, inv_d=1.0 / D),
        out_shape=jax.ShapeDtypeStruct((R_pad, 1), jnp.float32),
        grid_spec=grid_spec,
        compiler_params=pltpu.CompilerParams(
            dimension_semantics=("parallel",),   # independent tiles -> megacore-safe
            vmem_limit_bytes=48 * 1024 * 1024,   # actual usage ~16-20 MiB, fits all gens
        ),
        cost_estimate=cost,
    )(xf, yf, mf)

    per_row = per_row[:R, 0]  # masked (x_mean - y_mean)^2 per row

    if reduction == "mean":
        # NOTE: matches the reference exactly -- an all-zero mask yields inf/NaN,
        # same as the PyTorch original.
        return jnp.sum(per_row) / jnp.sum(mask_f32)
    elif reduction == "sum":
        return jnp.sum(per_row)
    else:  # 'none' -> per-element masked mse map, shape of prediction_mask
        return per_row.reshape(prediction_mask.shape)


def _reference(x, y, prediction_mask, reduction="mean"):
    x_mean = jnp.mean(x.astype(jnp.float32), axis=-1)
    y_mean = jnp.mean(y.astype(jnp.float32), axis=-1)
    mse = (x_mean - y_mean) ** 2 * prediction_mask
    if reduction == "mean":
        return jnp.sum(mse) / jnp.sum(prediction_mask)
    elif reduction == "sum":
        return jnp.sum(mse)
    return mse


if __name__ == "__main__":
    B, S, D = 2, 8, 32
    key = jax.random.PRNGKey(0)
    kx, ky, km = jax.random.split(key, 3)

    x = jax.random.normal(kx, (B, S, D), dtype=jnp.float32)
    y = jax.random.normal(ky, (B, S, D), dtype=jnp.float32)
    prediction_mask = (jax.random.uniform(km, (B, S)) > 0.4).astype(jnp.float32)
    prediction_mask = prediction_mask.at[0, 0].set(1.0)  # ensure >=1 valid element

    out_mean = jax.block_until_ready(
        vector_average_mse_loss(x, y, prediction_mask, "mean"))
    out_sum = jax.block_until_ready(
        vector_average_mse_loss(x, y, prediction_mask, "sum"))
    out_none = jax.block_until_ready(
        vector_average_mse_loss(x, y, prediction_mask, "none"))

    ref_mean = _reference(x, y, prediction_mask, "mean")
    ref_sum = _reference(x, y, prediction_mask, "sum")
    ref_none = _reference(x, y, prediction_mask, "none")

    assert jnp.allclose(out_mean, ref_mean, rtol=1e-5, atol=1e-6), (out_mean, ref_mean)
    assert jnp.allclose(out_sum, ref_sum, rtol=1e-5, atol=1e-6), (out_sum, ref_sum)
    assert jnp.allclose(out_none, ref_none, rtol=1e-5, atol=1e-6)

    # Native-dtype (bf16) path: HBM traffic stays bf16, upcast happens per-tile.
    xb, yb = x.astype(jnp.bfloat16), y.astype(jnp.bfloat16)
    out_bf16 = jax.block_until_ready(
        vector_average_mse_loss(xb, yb, prediction_mask, "mean"))
    ref_bf16 = _reference(xb, yb, prediction_mask, "mean")
    assert jnp.allclose(out_bf16, ref_bf16, rtol=5e-2, atol=5e-2), (out_bf16, ref_bf16)

    print("KERNEL_OK")
</pallas_src>

<mosaic_0001>
module attributes {stable_mosaic.version = 11 : i64} {
  func.func @_vavg_mse_row_kernel(%arg0: i32, %arg1: memref<16x32xf32, #tpu.memory_space<vmem>>, %arg2: memref<16x32xf32, #tpu.memory_space<vmem>>, %arg3: memref<16x1xf32, #tpu.memory_space<vmem>>, %arg4: memref<16x1xf32, #tpu.memory_space<vmem>>) attributes {dimension_semantics = [#tpu.dimension_semantics<parallel>], iteration_bounds = array<i64: 1>, scalar_prefetch = 0 : i64, scratch_operands = 0 : i64, tpu.core_type = #tpu.core_type<tc>, window_params = [{transform_indices = @transform_0, window_bounds = array<i64: 16, 32>}, {transform_indices = @transform_1, window_bounds = array<i64: 16, 32>}, {transform_indices = @transform_2, window_bounds = array<i64: 16, 1>}, {transform_indices = @transform_3, window_bounds = array<i64: 16, 1>}]} {
    %c0 = arith.constant 0 : index
    %c0_0 = arith.constant 0 : index
    %0 = vector.load %arg1[%c0, %c0_0] : memref<16x32xf32, #tpu.memory_space<vmem>>, vector<16x32xf32>
    %c0_1 = arith.constant 0 : index
    %c0_2 = arith.constant 0 : index
    %1 = vector.load %arg2[%c0_1, %c0_2] : memref<16x32xf32, #tpu.memory_space<vmem>>, vector<16x32xf32>
    %2 = arith.subf %0, %1 : vector<16x32xf32>
    %cst = arith.constant dense<0.000000e+00> : vector<16xf32>
    %3 = vector.multi_reduction <add>, %2, %cst [1] : vector<16x32xf32> to vector<16xf32>
    %4 = vector.shape_cast %3 : vector<16xf32> to vector<16x1xf32>
    %cst_3 = arith.constant 3.125000e-02 : f32
    %5 = vector.broadcast %cst_3 : f32 to vector<16x1xf32>
    %6 = arith.mulf %4, %5 : vector<16x1xf32>
    %7 = arith.mulf %6, %6 : vector<16x1xf32>
    %c0_4 = arith.constant 0 : index
    %c0_5 = arith.constant 0 : index
    %8 = vector.load %arg3[%c0_4, %c0_5] : memref<16x1xf32, #tpu.memory_space<vmem>>, vector<16x1xf32>
    %9 = arith.mulf %7, %8 : vector<16x1xf32>
    %c0_6 = arith.constant 0 : index
    %c0_7 = arith.constant 0 : index
    %10 = vector.load %arg4[%c0_6, %c0_7] : memref<16x1xf32, #tpu.memory_space<vmem>>, vector<16x1xf32>
    tpu.vector_store %arg4[%c0_6, %c0_7], %9 {strides = array<i32>} : memref<16x1xf32, #tpu.memory_space<vmem>>, vector<16x1xf32>,
    return
  }
  func.func @transform_0(%arg0: i32) -> (i32, i32) {
    %c0_i32 = arith.constant 0 : i32
    %c0_i32_0 = arith.constant 0 : i32
    return %arg0, %c0_i32 : i32, i32
  }
  func.func @transform_1(%arg0: i32) -> (i32, i32) {
    %c0_i32 = arith.constant 0 : i32
    %c0_i32_0 = arith.constant 0 : i32
    return %arg0, %c0_i32 : i32, i32
  }
  func.func @transform_2(%arg0: i32) -> (i32, i32) {
    %c0_i32 = arith.constant 0 : i32
    %c0_i32_0 = arith.constant 0 : i32
    return %arg0, %c0_i32 : i32, i32
  }
  func.func @transform_3(%arg0: i32) -> (i32, i32) {
    %c0_i32 = arith.constant 0 : i32
    %c0_i32_0 = arith.constant 0 : i32
    return %arg0, %c0_i32 : i32, i32
  }
}

</mosaic_0001>

<bundles_post_ra>
// kernel: tpu_custom_call.1
= control target key start
LH: loop header
LB: loop body
LE: loop exit
PB: predicated region body
PF: predicated region fallthrough
CT: control target
= control target key end

     0   :  { %8 = vsyncpa [#allocation3], 0  ;;  %s84_s12 = smov [#allocation2]   ;;  %s137_s0 = inlined_call_operand.vmem [shape: f32[16,32], index: 0, kind: input, shape index: {}]   ;;  %s138_s1 = inlined_call_operand.hbm [shape: f32[16,32], index: 1, kind: input, shape index: {}]   ;;  %s139_s2 = inlined_call_operand.vmem [shape: f32[16,1], index: 2, kind: input, shape index: {}]   ;;  %s140_s3 = inlined_call_operand.vmem [shape: f32[16,1], index: 3, kind: output, shape index: {}]  }
   0x1   :  { %s16_s13 = sshll.u32 %s84_s12, 4  ;;  %s60_s16 = scalar_lea.hbm %s138_s1, 256  ;;  %s17_s13 = int_to_ptr.vmem [resolvable:$true] %s16_s13 }
   0x2   :  { %p61_p0 = scmp.ne.s32.totalorder %s138_s1, %s60_s16  ;;  %p64_p1 = scmp.lt.u32.totalorder %s60_s16, %s138_s1 }
   0x4   :  { %p66_p2 = pnand %p64_p1, %p61_p0 }
   0x6   :  { %69 = shalt.err (!%p66_p2)
}
   0x7   :  { %s70_s21 = scalar_lea.vmem %s17_s13, 256  ;;  %p75_p4 = scmp.lt.s32.totalorder %s17_s13, %s17_s13 }
   0x8   :  { %p71_p3 = scmp.ne.s32.totalorder %s17_s13, %s70_s21  ;;  %p76_p5 = scmp.lt.s32.totalorder %s70_s21, %s70_s21 }
   0xa   :  { %p77_p6 = por %p76_p5, %p75_p4 }
   0xc   :  { %p78_p7 = pnand %p77_p6, %p71_p3 }
   0xe   :  { %81 = shalt.err (!%p78_p7)
}
   0xf   :  { %s85_s22 = smov 128   ;;  %s86_s23 = smov 8  }
  0x10   :  { %22 = dma.hbm_to_vmem [thread:$0]  %s138_s1, 256, %s17_s13, [#allocation3], %s85_s22, %s85_s22, %s86_s23  }
  0x11   :  { %82 = dma.done.wait [#allocation3], 256  }
  0x12   :  { %83 = vsyncadd [#allocation3], 4294967040  ;;  %v28_v0 = vld [vmem:[%s137_s0] sm:$0xff]  ;;  %vm34_vm0 = vcmask 261120   ;;  %v29_v2 = vld [vmem:[%s137_s0 + $0x8] sm:$0xff]  ;;  %vm49_vm1 = vcmask 7168  }
  0x13   :  { %v30_v1 = vld [vmem:[#allocation2] sm:$0xff]  ;;  %v31_v4 = vld [vmem:[#allocation2 + $0x8] sm:$0xff] }
  0x14   :  { %v32_v3 = vsub.f32 %v28_v0, %v30_v1  ;;  %v33_v5 = vsub.f32 %v29_v2, %v31_v4  ;;  %v45_v10 = vld [vmem:[%s139_s2] sm:$0xff]  ;;  %v46_v15 = vld [vmem:[%s139_s2 + $0x8] sm:$0xff] }
  0x16   :  { %v35_v6 = vsel %vm34_vm0, %v32_v3, 0.0  ;;  %v38_v7 = vsel %vm34_vm0, %v33_v5, 0.0 }
  0x17   :  { %36 = vadd.xlane.f32.xlu0 %v35_v6 }
  0x1b   :  { %39 = vadd.xlane.f32.xlu0 %v38_v7 }
  0xa4   :  { %v37_v8 = vpop.xlane.xlu0 %36 }
  0xa5   :  { %v41_v9 = vmul.f32 0.03125, %v37_v8 }
  0xa7   :  { %v43_v11 = vmul.f32 %v41_v9, %v41_v9 }
  0xa8   :  { %v40_v12 = vpop.xlane.xlu0 %39 }
  0xa9   :  { %v47_v13 = vmul.f32 %v45_v10, %v43_v11  ;;  %v42_v14 = vmul.f32 0.03125, %v40_v12 }
  0xab   :  { %50 = vst.msk [vmem:[%s140_s3] sm:$0xff] %vm49_vm1, %v47_v13  ;;  %v44_v16 = vmul.f32 %v42_v14, %v42_v14 }
  0xad   :  { %v48_v17 = vmul.f32 %v46_v15, %v44_v16 }
  0xaf   :  { %51 = vst.msk [vmem:[%s140_s3 + $0x8] sm:$0xff] %vm49_vm1, %v48_v17 }
  0xb0   :  { %56 = vsyncpa [#allocation3], 1 }

</bundles_post_ra>
